<compile_context>
chip_gen: v7x
topology: tpu7x:2x2x1
jax: 0.10.0
libtpu: 0.0.40
codegen_flags: <defaults>
</compile_context>

<pallas_src>
import jax
import jax.numpy as jnp
from jax.experimental import pallas as pl
from jax.experimental.pallas import tpu as pltpu


# ----------------------------------------------------------------------------
# Kernel 1: hoisted key/value projections for all frames (one call, grid=(T,)).
# ----------------------------------------------------------------------------
def _kv_proj_kernel(fm_ref, wk_ref, wv_ref, key_ref, val_ref):
    B, N, C = fm_ref.shape
    x = fm_ref[...].reshape(B * N, C)                       # leading-dim merge (free)
    k = jnp.dot(x, wk_ref[...], preferred_element_type=jnp.float32)
    v = jnp.dot(x, wv_ref[...], preferred_element_type=jnp.float32)
    key_ref[...] = k.reshape(B, N, -1)
    val_ref[...] = v.reshape(B, N, -1)


def kv_project(fm_tbnc, p):
    T, B, N, C = fm_tbnc.shape
    H = p['Wk'].shape[-1]
    grid_spec = pltpu.PrefetchScalarGridSpec(
        num_scalar_prefetch=0,
        grid=(T,),
        in_specs=[
            pl.BlockSpec((None, B, N, C), lambda t: (t, 0, 0, 0)),  # one frame / step
            pl.BlockSpec((C, H), lambda t: (0, 0)),                 # Wk (resident)
            pl.BlockSpec((C, H), lambda t: (0, 0)),                 # Wv (resident)
        ],
        out_specs=(
            pl.BlockSpec((None, B, N, H), lambda t: (t, 0, 0, 0)),
            pl.BlockSpec((None, B, N, H), lambda t: (t, 0, 0, 0)),
        ),
    )
    return pl.pallas_call(
        _kv_proj_kernel,
        out_shape=(jax.ShapeDtypeStruct((T, B, N, H), jnp.float32),
                   jax.ShapeDtypeStruct((T, B, N, H), jnp.float32)),
        grid_spec=grid_spec,
        compiler_params=pltpu.CompilerParams(
            dimension_semantics=("parallel",)),
    )(fm_tbnc, p['Wk'], p['Wv'])


# ----------------------------------------------------------------------------
# Kernel 2: fused time loop — attention + LSTMCell + Linear + softmax per step.
# ----------------------------------------------------------------------------
def _recurrent_kernel(key_ref, val_ref, prior_ref, h0_ref, c0_ref,
                      wh_ref, v_ref, wih_ref, whh_ref, b_ref,
                      wfc_ref, bfc_ref,
                      probs_ref, h_out_ref, c_out_ref,
                      h_sc, c_sc):
    t = pl.program_id(0)

    @pl.when(t == 0)
    def _init():
        h_sc[...] = h0_ref[...]
        c_sc[...] = c0_ref[...]

    h = h_sc[...]                                  # (B, H)
    c = c_sc[...]                                  # (B, H)
    key = key_ref[...]                             # (B, N, H)
    value = val_ref[...]                           # (B, N, H), H == C
    prior = prior_ref[...]                         # (B, N)
    B, N, H = key.shape

    # --- additive attention, softmax over the spatial axis N ---
    query = jnp.dot(h, wh_ref[...], preferred_element_type=jnp.float32)    # (B, H)
    tval = jnp.tanh(query[:, None, :] + key)                               # (B, N, H)
    scores = jnp.sum(tval * v_ref[...].reshape(1, 1, H), axis=-1)          # (B, N)
    m = jnp.max(scores, axis=-1, keepdims=True)
    e = jnp.exp(scores - m)
    scores = e * pl.reciprocal(jnp.sum(e, axis=-1, keepdims=True), approx=True)

    attn_w = scores * prior                                                # (B, N)
    context = jnp.sum(attn_w[:, :, None] * value, axis=1)                  # (B, C)
    sum_w = jnp.maximum(jnp.sum(attn_w, axis=-1, keepdims=True), 1e-5)     # (B, 1)
    x = context * pl.reciprocal(sum_w, approx=True)                        # (B, C)

    # --- PyTorch LSTMCell, gate order (i, f, g, o); weights stacked (4, ., H)
    #     so each gate is a leading-axis index (no lane-axis slicing). ---
    def gate(k):
        return (jnp.dot(x, wih_ref[k], preferred_element_type=jnp.float32)
                + jnp.dot(h, whh_ref[k], preferred_element_type=jnp.float32)
                + b_ref[k])                                                # (B, H)

    i_g = jax.nn.sigmoid(gate(0))
    f_g = jax.nn.sigmoid(gate(1))
    g_g = jnp.tanh(gate(2))
    o_g = jax.nn.sigmoid(gate(3))
    c_new = f_g * c + i_g * g_g
    h_new = o_g * jnp.tanh(c_new)

    h_sc[...] = h_new
    c_sc[...] = c_new
    h_out_ref[...] = h_new
    c_out_ref[...] = c_new

    # --- fused classifier: Linear + softmax over classes, written per step ---
    logits = (jnp.dot(h_new, wfc_ref[...], preferred_element_type=jnp.float32)
              + bfc_ref[...])                                              # (B, O)
    lm = jnp.max(logits, axis=-1, keepdims=True)
    le = jnp.exp(logits - lm)
    probs_ref[...] = le * pl.reciprocal(jnp.sum(le, axis=-1, keepdims=True),
                                        approx=True)


def _const_spec(shape):
    rank = len(shape)
    if rank == 2:
        return pl.BlockSpec(shape, lambda t: (0, 0))
    if rank == 3:
        return pl.BlockSpec(shape, lambda t: (0, 0, 0))
    raise ValueError('unsupported rank')


def recurrent_classify(key_all, val_all, prior_tbn, h0, c0, p):
    T, B, N, H = key_all.shape
    O = p['W_fc_T'].shape[-1]
    grid_spec = pltpu.PrefetchScalarGridSpec(
        num_scalar_prefetch=0,
        grid=(T,),
        in_specs=[
            pl.BlockSpec((None, B, N, H), lambda t: (t, 0, 0, 0)),   # key (streamed)
            pl.BlockSpec((None, B, N, H), lambda t: (t, 0, 0, 0)),   # value (streamed)
            pl.BlockSpec((None, B, N), lambda t: (t, 0, 0)),         # prior (streamed)
            _const_spec((B, H)),                                     # h0
            _const_spec((B, H)),                                     # c0
            _const_spec(p['Wh'].shape),                              # Wh
            _const_spec(p['v'].shape),                               # v
            _const_spec(p['W_ih_T'].shape),                          # (4, C, H)
            _const_spec(p['W_hh_T'].shape),                          # (4, H, H)
            _const_spec(p['b'].shape),                               # (4, 1, H)
            _const_spec(p['W_fc_T'].shape),                          # (H, O)
            _const_spec(p['b_fc'].shape),                            # (1, O)
        ],
        out_specs=(
            pl.BlockSpec((None, B, O), lambda t: (t, 0, 0)),         # probs slab
            _const_spec((B, H)),                                     # final h
            _const_spec((B, H)),                                     # final c
        ),
        scratch_shapes=[pltpu.VMEM((B, H), jnp.float32),             # h carry
                        pltpu.VMEM((B, H), jnp.float32)],            # c carry
    )
    return pl.pallas_call(
        _recurrent_kernel,
        out_shape=(jax.ShapeDtypeStruct((T, B, O), jnp.float32),
                   jax.ShapeDtypeStruct((B, H), jnp.float32),
                   jax.ShapeDtypeStruct((B, H), jnp.float32)),
        grid_spec=grid_spec,
        compiler_params=pltpu.CompilerParams(
            dimension_semantics=("arbitrary",)),     # serial recurrence
    )(key_all, val_all, prior_tbn, h0, c0,
      p['Wh'], p['v'], p['W_ih_T'], p['W_hh_T'], p['b'],
      p['W_fc_T'], p['b_fc'])


# ----------------------------------------------------------------------------
# MiCTRANet forward (attention head + classifier).
# ----------------------------------------------------------------------------
def mictranet_forward(feat_maps, h0, prior_maps, params, mode='online',
                      feat_idx=None):
    if mode not in ('online', 'offline'):
        raise ValueError('Invalid value for parameter `mode`: {}'.format(mode))
    B, C, L, Hf, Wf = feat_maps.shape
    N = Hf * Wf
    H = h0[0].shape[-1]
    if H != C:
        # VisualAttentionCell's `.view(N, B, C)` on the value projection
        # requires hidden_size == attn_size (== backbone channels).
        raise ValueError('hidden_size must equal attn_size/backbone channels')

    if mode == 'online':
        i = (L // 2) if feat_idx is None else feat_idx
        # one selected frame -> (1, B, N, C); prior (B, 1, Hf, Wf) -> (1, B, N)
        fm = jnp.transpose(feat_maps[:, :, i], (0, 2, 3, 1)).reshape(1, B, N, C)
        pm = prior_maps.reshape(B, N)[None]
    else:
        # all frames -> (L, B, N, C); prior (B, L, Hf, Wf) -> (L, B, N)
        fm = jnp.transpose(feat_maps, (2, 0, 3, 4, 1)).reshape(L, B, N, C)
        pm = jnp.transpose(prior_maps, (1, 0, 2, 3)).reshape(L, B, N)

    key_all, val_all = kv_project(fm, params)                 # (T, B, N, H) x2
    probs_tbo, hT, cT = recurrent_classify(key_all, val_all, pm,
                                           h0[0], h0[1], params)
    probs = jnp.transpose(probs_tbo, (1, 0, 2))               # (B, T, O)
    return probs, (hT, cT)


# ----------------------------------------------------------------------------
# Deterministic parameter init (synthetic; shapes follow the nn.Module).
# ----------------------------------------------------------------------------
def init_params(key, hidden_size, attn_size, output_size):
    assert hidden_size == attn_size
    H, C, O = hidden_size, attn_size, output_size
    ks = jax.random.split(key, 10)
    s = 0.1
    # torch LSTMCell: weight_ih (4H, C), weight_hh (4H, H), gate order (i,f,g,o).
    W_ih = s * jax.random.normal(ks[4], (4, H, C), jnp.float32)
    W_hh = s * jax.random.normal(ks[5], (4, H, H), jnp.float32)
    b_ih = s * jax.random.normal(ks[6], (4, H), jnp.float32)
    b_hh = s * jax.random.normal(ks[7], (4, H), jnp.float32)
    return {
        'Wh': s * jax.random.normal(ks[0], (H, H), jnp.float32),
        'Wk': s * jax.random.normal(ks[1], (C, H), jnp.float32),
        'Wv': s * jax.random.normal(ks[2], (C, H), jnp.float32),
        # torch shape (H, 1); stored as a row vector (1, H)
        'v': s * jax.random.normal(ks[3], (1, H), jnp.float32),
        # stacked & pre-transposed per gate: (4, C, H) / (4, H, H)
        'W_ih_T': jnp.transpose(W_ih, (0, 2, 1)),
        'W_hh_T': jnp.transpose(W_hh, (0, 2, 1)),
        # folded bias b_ih + b_hh, shaped (4, 1, H)
        'b': (b_ih + b_hh)[:, None, :],
        # torch Linear weight (O, H), pre-transposed
        'W_fc_T': s * jax.random.normal(ks[8], (H, O), jnp.float32),
        'b_fc': jnp.zeros((1, O), jnp.float32),
    }


if __name__ == "__main__":
    B, C, L, Hf, Wf = 2, 32, 8, 4, 4
    hidden_size = attn_size = C
    output_size = 16

    key = jax.random.PRNGKey(0)
    k1, k2, k3, k4, k5, kp = jax.random.split(key, 6)
    feat_maps = jax.random.normal(k1, (B, C, L, Hf, Wf), jnp.float32)
    prior_online = jax.random.uniform(k2, (B, 1, Hf, Wf), jnp.float32)
    prior_offline = jax.random.uniform(k3, (B, L, Hf, Wf), jnp.float32)
    h0 = (0.1 * jax.random.normal(k4, (B, hidden_size), jnp.float32),
          0.1 * jax.random.normal(k5, (B, hidden_size), jnp.float32))
    params = init_params(kp, hidden_size, attn_size, output_size)

    probs_on, hT_on = mictranet_forward(feat_maps, h0, prior_online, params,
                                        mode='online')
    probs_off, hT_off = mictranet_forward(feat_maps, h0, prior_offline, params,
                                          mode='offline')
    jax.block_until_ready((probs_on, hT_on, probs_off, hT_off))

    assert probs_on.shape == (B, 1, output_size)
    assert probs_off.shape == (B, L, output_size)
    assert hT_on[0].shape == (B, hidden_size) and hT_on[1].shape == (B, hidden_size)
    assert hT_off[0].shape == (B, hidden_size) and hT_off[1].shape == (B, hidden_size)
    assert bool(jnp.all(jnp.isfinite(probs_off))) and bool(jnp.all(jnp.isfinite(probs_on)))
    print("KERNEL_OK")
</pallas_src>

<mosaic_0001>
module attributes {stable_mosaic.version = 11 : i64} {
  func.func @_kv_proj_kernel(%arg0: i32, %arg1: memref<1x2x16x32xf32, #tpu.memory_space<vmem>>, %arg2: memref<32x32xf32, #tpu.memory_space<vmem>>, %arg3: memref<32x32xf32, #tpu.memory_space<vmem>>, %arg4: memref<1x2x16x32xf32, #tpu.memory_space<vmem>>, %arg5: memref<1x2x16x32xf32, #tpu.memory_space<vmem>>) attributes {dimension_semantics = [#tpu.dimension_semantics<parallel>], iteration_bounds = array<i64: 1>, scalar_prefetch = 0 : i64, scratch_operands = 0 : i64, tpu.core_type = #tpu.core_type<tc>, window_params = [{transform_indices = @transform_0, window_bounds = array<i64: 1, 2, 16, 32>}, {pipeline_mode = #tpu.pipeline_mode<synchronous>, transform_indices = @transform_1, window_bounds = array<i64: 32, 32>}, {pipeline_mode = #tpu.pipeline_mode<synchronous>, transform_indices = @transform_2, window_bounds = array<i64: 32, 32>}, {transform_indices = @transform_3, window_bounds = array<i64: 1, 2, 16, 32>}, {transform_indices = @transform_4, window_bounds = array<i64: 1, 2, 16, 32>}]} {
    %c0 = arith.constant 0 : index
    %c0_0 = arith.constant 0 : index
    %c0_1 = arith.constant 0 : index
    %c0_2 = arith.constant 0 : index
    %0 = vector.load %arg1[%c0, %c0_0, %c0_1, %c0_2] : memref<1x2x16x32xf32, #tpu.memory_space<vmem>>, vector<1x2x16x32xf32>
    %1 = vector.shape_cast %0 : vector<1x2x16x32xf32> to vector<2x16x32xf32>
    %2 = vector.shape_cast %1 : vector<2x16x32xf32> to vector<32x32xf32>
    %c0_3 = arith.constant 0 : index
    %c0_4 = arith.constant 0 : index
    %3 = vector.load %arg2[%c0_3, %c0_4] : memref<32x32xf32, #tpu.memory_space<vmem>>, vector<32x32xf32>
    %cst = arith.constant dense<0.000000e+00> : vector<32x32xf32>
    %4 = tpu.matmul %2, %3, %cst {dimension_numbers = #tpu.dot_dimension_numbers<[1], [0], [0], [1], [0, 0, 1, 1], [], []>} : vector<32x32xf32>, vector<32x32xf32>, vector<32x32xf32> -> vector<32x32xf32>
    %c0_5 = arith.constant 0 : index
    %c0_6 = arith.constant 0 : index
    %5 = vector.load %arg3[%c0_5, %c0_6] : memref<32x32xf32, #tpu.memory_space<vmem>>, vector<32x32xf32>
    %cst_7 = arith.constant dense<0.000000e+00> : vector<32x32xf32>
    %6 = tpu.matmul %2, %5, %cst_7 {dimension_numbers = #tpu.dot_dimension_numbers<[1], [0], [0], [1], [0, 0, 1, 1], [], []>} : vector<32x32xf32>, vector<32x32xf32>, vector<32x32xf32> -> vector<32x32xf32>
    %7 = vector.shape_cast %4 : vector<32x32xf32> to vector<2x16x32xf32>
    %c0_8 = arith.constant 0 : index
    %c0_9 = arith.constant 0 : index
    %c0_10 = arith.constant 0 : index
    %c0_11 = arith.constant 0 : index
    %8 = vector.load %arg4[%c0_8, %c0_9, %c0_10, %c0_11] : memref<1x2x16x32xf32, #tpu.memory_space<vmem>>, vector<1x2x16x32xf32>
    %9 = vector.shape_cast %8 : vector<1x2x16x32xf32> to vector<2x16x32xf32>
    %10 = vector.shape_cast %7 : vector<2x16x32xf32> to vector<1x2x16x32xf32>
    tpu.vector_store %arg4[%c0_8, %c0_9, %c0_10, %c0_11], %10 {strides = array<i32>} : memref<1x2x16x32xf32, #tpu.memory_space<vmem>>, vector<1x2x16x32xf32>,
    %11 = vector.shape_cast %6 : vector<32x32xf32> to vector<2x16x32xf32>
    %c0_12 = arith.constant 0 : index
    %c0_13 = arith.constant 0 : index
    %c0_14 = arith.constant 0 : index
    %c0_15 = arith.constant 0 : index
    %12 = vector.load %arg5[%c0_12, %c0_13, %c0_14, %c0_15] : memref<1x2x16x32xf32, #tpu.memory_space<vmem>>, vector<1x2x16x32xf32>
    %13 = vector.shape_cast %12 : vector<1x2x16x32xf32> to vector<2x16x32xf32>
    %14 = vector.shape_cast %11 : vector<2x16x32xf32> to vector<1x2x16x32xf32>
    tpu.vector_store %arg5[%c0_12, %c0_13, %c0_14, %c0_15], %14 {strides = array<i32>} : memref<1x2x16x32xf32, #tpu.memory_space<vmem>>, vector<1x2x16x32xf32>,
    return
  }
  func.func @transform_0(%arg0: i32) -> (i32, i32, i32, i32) {
    %c0_i32 = arith.constant 0 : i32
    %c0_i32_0 = arith.constant 0 : i32
    %c0_i32_1 = arith.constant 0 : i32
    %c0_i32_2 = arith.constant 0 : i32
    return %arg0, %c0_i32, %c0_i32_0, %c0_i32_1 : i32, i32, i32, i32
  }
  func.func @transform_1(%arg0: i32) -> (i32, i32) {
    %c0_i32 = arith.constant 0 : i32
    %c0_i32_0 = arith.constant 0 : i32
    %c0_i32_1 = arith.constant 0 : i32
    return %c0_i32, %c0_i32_0 : i32, i32
  }
  func.func @transform_2(%arg0: i32) -> (i32, i32) {
    %c0_i32 = arith.constant 0 : i32
    %c0_i32_0 = arith.constant 0 : i32
    %c0_i32_1 = arith.constant 0 : i32
    return %c0_i32, %c0_i32_0 : i32, i32
  }
  func.func @transform_3(%arg0: i32) -> (i32, i32, i32, i32) {
    %c0_i32 = arith.constant 0 : i32
    %c0_i32_0 = arith.constant 0 : i32
    %c0_i32_1 = arith.constant 0 : i32
    %c0_i32_2 = arith.constant 0 : i32
    return %arg0, %c0_i32, %c0_i32_0, %c0_i32_1 : i32, i32, i32, i32
  }
  func.func @transform_4(%arg0: i32) -> (i32, i32, i32, i32) {
    %c0_i32 = arith.constant 0 : i32
    %c0_i32_0 = arith.constant 0 : i32
    %c0_i32_1 = arith.constant 0 : i32
    %c0_i32_2 = arith.constant 0 : i32
    return %arg0, %c0_i32, %c0_i32_0, %c0_i32_1 : i32, i32, i32, i32
  }
}

</mosaic_0001>

<bundles_post_ra>
// kernel: tpu_custom_call.1
= control target key start
LH: loop header
LB: loop body
LE: loop exit
PB: predicated region body
PF: predicated region fallthrough
CT: control target
= control target key end

     0   :  { %10 = vsyncpa [#allocation3], 0  ;;  %s626_s0 = inlined_call_operand.hbm [shape: f32[1,2,16,32], index: 0, kind: input, shape index: {}]   ;;  %s627_s1 = inlined_call_operand.hbm [shape: f32[32,32], index: 1, kind: input, shape index: {}]   ;;  %s628_s2 = inlined_call_operand.hbm [shape: f32[32,32], index: 2, kind: input, shape index: {}]   ;;  %s629_s3 = inlined_call_operand.hbm [shape: f32[1,2,16,32], index: 3, kind: output, shape index: {0}]   ;;  %s630_s4 = inlined_call_operand.hbm [shape: f32[1,2,16,32], index: 4, kind: output, shape index: {1}]  }
   0x1   :  { %11 = vsyncpa [#allocation6], 0 }
   0x2   :  { %12 = vsyncpa [#allocation4], 0 }
   0x3   :  { %13 = vsyncpa [#allocation10], 0  ;;  %s489_s15 = smov [#allocation5]   ;;  %s490_s17 = smov [#allocation2]  }
   0x4   :  { %s31_s16 = sshll.u32 %s489_s15, 4  ;;  %s19_s18 = sshll.u32 %s490_s17, 4  ;;  %s32_s16 = int_to_ptr.vmem [resolvable:$true] %s31_s16  ;;  %s521_s18 = int_to_ptr.vmem [resolvable:$true] %s19_s18 }
   0x5   :  { %s371_s21 = scalar_lea.hbm %s627_s1, 512 }
   0x6   :  { %p372_p0 = scmp.ne.s32.totalorder %s627_s1, %s371_s21  ;;  %p375_p1 = scmp.lt.u32.totalorder %s371_s21, %s627_s1 }
   0x8   :  { %p377_p2 = pnand %p375_p1, %p372_p0 }
   0xa   :  { %380 = shalt.err (!%p377_p2)
}
   0xb   :  { %s381_s26 = scalar_lea.vmem %s32_s16, 512  ;;  %p386_p4 = scmp.lt.s32.totalorder %s32_s16, %s32_s16 }
   0xc   :  { %p382_p3 = scmp.ne.s32.totalorder %s32_s16, %s381_s26  ;;  %p387_p5 = scmp.lt.s32.totalorder %s381_s26, %s381_s26 }
   0xe   :  { %p388_p6 = por %p387_p5, %p386_p4 }
  0x10   :  { %p389_p7 = pnand %p388_p6, %p382_p3 }
  0x12   :  { %392 = shalt.err (!%p389_p7)
}
  0x13   :  { %s491_s27 = smov 128   ;;  %s492_s28 = smov 8  }
  0x14   :  { %37 = dma.hbm_to_vmem [thread:$0]  %s627_s1, 512, %s32_s16, [#allocation6], %s491_s27, %s491_s27, %s492_s28  }
  0x15   :  { %s393_s7 = scalar_lea.hbm %s626_s0, 512 }
  0x16   :  { %p394_p8 = scmp.ne.s32.totalorder %s626_s0, %s393_s7  ;;  %p397_p9 = scmp.lt.u32.totalorder %s393_s7, %s626_s0 }
  0x18   :  { %p399_p10 = pnand %p397_p9, %p394_p8 }
  0x1a   :  { %402 = shalt.err (!%p399_p10)
}
  0x1b   :  { %s403_s12 = scalar_lea.vmem %s521_s18, 512  ;;  %p408_p12 = scmp.lt.s32.totalorder %s521_s18, %s521_s18 }
  0x1c   :  { %p404_p11 = scmp.ne.s32.totalorder %s521_s18, %s403_s12  ;;  %p409_p13 = scmp.lt.s32.totalorder %s403_s12, %s403_s12 }
  0x1e   :  { %p410_p0 = por %p409_p13, %p408_p12 }
  0x20   :  { %p411_p1 = pnand %p410_p0, %p404_p11 }
  0x22   :  { %414 = shalt.err (!%p411_p1)
}
  0x23   :  { %25 = dma.hbm_to_vmem [thread:$0]  %s626_s0, 512, %s521_s18, [#allocation3], %s491_s27, %s491_s27, %s492_s28  }
  0x24   :  { %s493_s14 = smov [#allocation7]   ;;  %s415_s19 = scalar_lea.hbm %s628_s2, 512 }
  0x25   :  { %s43_s15 = sshll.u32 %s493_s14, 4  ;;  %p416_p2 = scmp.ne.s32.totalorder %s628_s2, %s415_s19  ;;  %s44_s15 = int_to_ptr.vmem [resolvable:$true] %s43_s15 }
  0x26   :  { %p419_p3 = scmp.lt.u32.totalorder %s415_s19, %s628_s2 }
  0x28   :  { %p421_p4 = pnand %p419_p3, %p416_p2 }
  0x2a   :  { %424 = shalt.err (!%p421_p4)
}
  0x2b   :  { %s425_s24 = scalar_lea.vmem %s44_s15, 512  ;;  %p430_p6 = scmp.lt.s32.totalorder %s44_s15, %s44_s15 }
  0x2c   :  { %p426_p5 = scmp.ne.s32.totalorder %s44_s15, %s425_s24  ;;  %p431_p7 = scmp.lt.s32.totalorder %s425_s24, %s425_s24 }
  0x2e   :  { %p432_p8 = por %p431_p7, %p430_p6 }
  0x30   :  { %p433_p9 = pnand %p432_p8, %p426_p5 }
  0x32   :  { %436 = shalt.err (!%p433_p9)
}
  0x33   :  { %49 = dma.hbm_to_vmem [thread:$0]  %s628_s2, 512, %s44_s15, [#allocation6], %s491_s27, %s491_s27, %s492_s28  }
  0x34   :  { %481 = dma.done.wait [#allocation3], 512  }
  0x35   :  { %482 = vsyncadd [#allocation3], 4294966784 }
  0x36   :  { %483 = dma.done.wait [#allocation6], 1024  }
  0x37   :  { %484 = vsyncadd [#allocation6], 4294966272  ;;  %v63_v0 = vld [vmem:[#allocation5] sm:$0xff]  ;;  %v64_v1 = vld [vmem:[#allocation5 + $0x8] sm:$0xff]  ;;  %vm67_vm0 = vcmask 261120   ;;  %s494_s2 = smov [#allocation8]  }
  0x38   :  { %v165_v2 = vld [vmem:[#allocation7] sm:$0xff]  ;;  %v348_v3 = vpack.c.bf16 %v64_v1, %v63_v0  ;;  %v166_v4 = vld [vmem:[#allocation7 + $0x8] sm:$0xff]  ;;  %v65_v5 = vld [vmem:[#allocation5 + $0x10] sm:$0xff]  ;;  %s267_s25 = sshll.u32 %s494_s2, 4  ;;  %s495_s26 = smov [#allocation9]   ;;  %s268_s25 = int_to_ptr.vmem [resolvable:$true] %s267_s25 }
  0x39   :  { %v66_v6 = vld [vmem:[#allocation5 + $0x18] sm:$0xff]  ;;  %v356_v7 = vpack.c.bf16 %v166_v4, %v165_v2  ;;  %v167_v9 = vld [vmem:[#allocation7 + $0x10] sm:$0xff]  ;;  %v59_v11 = vld [vmem:[#allocation2] sm:$0xff]  ;;  %s279_s29 = sshll.u32 %s495_s26, 4  ;;  %s437_s30 = scalar_lea.vmem %s268_s25, 512  ;;  %s586_s29 = int_to_ptr.vmem [resolvable:$true] %s279_s29 }
  0x3a   :  { %v352_v8 = vpack.c.bf16 %v66_v6, %v65_v5  ;;  %v168_v10 = vld [vmem:[#allocation7 + $0x18] sm:$0xff]  ;;  %349 = vmatprep.subr.bf16.mxu0 %v348_v3  ;;  %328 = vmatprep.mubr.msk.f32.mxu0 %vm67_vm0, %v59_v11  ;;  %v60_v13 = vld [vmem:[#allocation2 + $0x8] sm:$0xff]  ;;  %v61_v14 = vld [vmem:[#allocation2 + $0x10] sm:$0xff]  ;;  %p438_p10 = scmp.ne.s32.totalorder %s268_s25, %s437_s30  ;;  %p442_p11 = scmp.lt.s32.totalorder %s268_s25, %s268_s25 }
  0x3b   :  { %v360_v12 = vpack.c.bf16 %v168_v10, %v167_v9  ;;  %357 = vmatprep.subr.bf16.mxu1 %v356_v7  ;;  %351 = vmatpush3.bf16.msra.mxu0 %v348_v3  ;;  %v62_v15 = vld [vmem:[#allocation2 + $0x18] sm:$0xff]  ;;  %p443_p12 = scmp.lt.s32.totalorder %s437_s30, %s437_s30 }
  0x3c   :  { %359 = vmatpush3.bf16.msra.mxu1 %v356_v7  ;;  %353 = vmatprep.subr.bf16.mxu0 %v352_v8 }
  0x3d   :  { %361 = vmatprep.subr.bf16.mxu1 %v360_v12  ;;  %342 = vmatprep.mubr.msk.f32.mxu1 %vm67_vm0, %v59_v11  ;;  %p444_p13 = por %p443_p12, %p442_p11 }
  0x3f   :  { %355 = vmatpush3.bf16.msra.mxu0 %v352_v8  ;;  %p445_p0 = pnand %p444_p13, %p438_p10 }
  0x40   :  { %363 = vmatpush3.bf16.msra.mxu1 %v360_v12 }
  0x42   :  { %329 = vmatmul.mubr.msk.f32.vlgmr.msra.gmra.mrb[0].mxu0 %vm67_vm0, %v60_v13 }
  0x43   :  { %343 = vmatmul.mubr.msk.f32.vlgmr.msra.gmra.mrb[0].mxu1 %vm67_vm0, %v60_v13  ;;  %331 = vmatprep.mubr.msk.f32.mxu0 %vm67_vm0, %v61_v14 }
  0x44   :  { %345 = vmatprep.mubr.msk.f32.mxu1 %vm67_vm0, %v61_v14 }
  0x46   :  { %332 = vmatmul.mubr.msk.f32.gmra.mrb[2].mxu0 %vm67_vm0, %v62_v15 }
  0x47   :  { %346 = vmatmul.mubr.msk.f32.gmra.mrb[2].mxu1 %vm67_vm0, %v62_v15 }
 0x115   :  { %v330_v16 = vpop.f32.mrb[0].mxu0 }
 0x116   :  { %255 = vst.msk [vmem:[#allocation8 + $0x8] sm:$0xff] %vm67_vm0, %v330_v16  ;;  %v344_v17 = vpop.f32.mrb[0].mxu1  ;;  %v146_v18 = vpop.f32.mrb[1].mxu0 }
 0x117   :  { %259 = vst.msk [vmem:[#allocation9 + $0x8] sm:$0xff] %vm67_vm0, %v344_v17  ;;  %254 = vst.msk [vmem:[#allocation8] sm:$0xff] %vm67_vm0, %v146_v18  ;;  %v235_v19 = vpop.f32.mrb[1].mxu1 }
 0x118   :  { %258 = vst.msk [vmem:[#allocation9] sm:$0xff] %vm67_vm0, %v235_v19 }
 0x119   :  { %v333_v20 = vpop.f32.mrb[2].mxu0 }
 0x11a   :  { %257 = vst.msk [vmem:[#allocation8 + $0x18] sm:$0xff] %vm67_vm0, %v333_v20  ;;  %v347_v21 = vpop.f32.mrb[2].mxu1  ;;  %v156_v22 = vpop.f32.mrb[3].mxu0 }
 0x11b   :  { %261 = vst.msk [vmem:[#allocation9 + $0x18] sm:$0xff] %vm67_vm0, %v347_v21  ;;  %256 = vst.msk [vmem:[#allocation8 + $0x10] sm:$0xff] %vm67_vm0, %v156_v22  ;;  %v245_v23 = vpop.f32.mrb[3].mxu1 }
 0x11c   :  { %260 = vst.msk [vmem:[#allocation9 + $0x10] sm:$0xff] %vm67_vm0, %v245_v23 }
 0x11d   :  { %448 = shalt.err (!%p445_p0)
}
 0x11e   :  { %s449_s7 = scalar_lea.hbm %s629_s3, 512 }
 0x11f   :  { %p450_p1 = scmp.ne.s32.totalorder %s629_s3, %s449_s7  ;;  %p453_p2 = scmp.lt.u32.totalorder %s449_s7, %s629_s3 }
 0x121   :  { %p455_p3 = pnand %p453_p2, %p450_p1 }
 0x123   :  { %458 = shalt.err (!%p455_p3)
}
 0x124   :  { %273 = dma.vmem_to_hbm [thread:$0]  %s268_s25, 512, %s629_s3, [#allocation4], %s491_s27, %s491_s27, %s492_s28  }
 0x125   :  { %s459_s13 = scalar_lea.vmem %s586_s29, 512  ;;  %p464_p5 = scmp.lt.s32.totalorder %s586_s29, %s586_s29 }
 0x126   :  { %p460_p4 = scmp.ne.s32.totalorder %s586_s29, %s459_s13  ;;  %p465_p6 = scmp.lt.s32.totalorder %s459_s13, %s459_s13 }
 0x128   :  { %p466_p7 = por %p465_p6, %p464_p5 }
 0x12a   :  { %p467_p8 = pnand %p466_p7, %p460_p4 }
 0x12c   :  { %470 = shalt.err (!%p467_p8)
}
 0x12d   :  { %s471_s16 = scalar_lea.hbm %s630_s4, 512 }
 0x12e   :  { %p472_p9 = scmp.ne.s32.totalorder %s630_s4, %s471_s16  ;;  %p475_p10 = scmp.lt.u32.totalorder %s471_s16, %s630_s4 }
 0x130   :  { %p477_p11 = pnand %p475_p10, %p472_p9 }
 0x132   :  { %480 = shalt.err (!%p477_p11)
}
 0x133   :  { %285 = dma.vmem_to_hbm [thread:$0]  %s586_s29, 512, %s630_s4, [#allocation10], %s491_s27, %s491_s27, %s492_s28  }
 0x134   :  { %485 = dma.done.wait [#allocation4], 512  }
 0x135   :  { %486 = vsyncadd [#allocation4], 4294966784 }
 0x136   :  { %487 = dma.done.wait [#allocation10], 512  }
 0x137   :  { %488 = vsyncadd [#allocation10], 4294966784 }
 0x138   :  { %292 = vsyncpa [#allocation3], 1 }
 0x139   :  { %293 = vsyncpa [#allocation6], 1 }
 0x13a   :  { %294 = vsyncpa [#allocation4], 1 }
 0x13b   :  { %295 = vsyncpa [#allocation10], 1 }

</bundles_post_ra>
